<compile_context>
chip_gen: v7x
topology: tpu7x:2x2x1
jax: 0.10.0
libtpu: 0.0.40
codegen_flags: <defaults>
</compile_context>

<pallas_src>
import jax
import jax.numpy as jnp
from jax.experimental import pallas as pl
from jax.experimental.pallas import tpu as pltpu


def _round_up(x, m):
    return (x + m - 1) // m * m


def _is_v7x():
    try:
        return "v7" in jax.devices()[0].device_kind.lower()
    except Exception:
        return False


def _vmem_limit_bytes():
    """Scoped-VMEM limit derived from the actual part (fallback: conservative)."""
    try:
        cap = int(pltpu.get_tpu_info().vmem_capacity_bytes)
    except Exception:
        cap = 0
    if cap <= 0:
        cap = 64 * 1024 * 1024              # safe on every generation
    if _is_v7x():                            # v7x: 64 MiB per TensorCore
        cap = min(cap, 64 * 1024 * 1024)
    # Leave headroom for Mosaic internal scratch / double-buffered outputs.
    return max(32 * 1024 * 1024, cap - 16 * 1024 * 1024)


# --------------------------------------------------------------------------- #
# Kernels
# --------------------------------------------------------------------------- #
def _recal_kernel_packed(x12_ref, xcat_ref, w1_ref, b1_ref, w2_ref, b2_ref, o_ref):
    """Small-H path (3H <= 128).

    xcat = [x_add | x_mean | x_max | 0]          (tm, 128)  bf16
    w1   = blockdiag(W11, W21, W31), zero-padded (128, 128) bf16
    b1   = [b11 | b21 | b31 | 0]                 (1, 128)   f32
    w2   = [W12 ; W22 ; W32 ; 0]                 (128, H)   bf16
    b2   = b12 + b22 + b32                       (1, H)     f32
    """
    h = jnp.dot(xcat_ref[...], w1_ref[...], preferred_element_type=jnp.float32)
    h = jnp.maximum(h + b1_ref[...], 0.0)                 # ReLU (padding stays 0)
    x3 = jnp.dot(h.astype(w2_ref.dtype), w2_ref[...],
                 preferred_element_type=jnp.float32) + b2_ref[...]
    o_ref[...] = (jax.nn.sigmoid(x3) * x12_ref[...].astype(jnp.float32)
                  ).astype(o_ref.dtype)


def _recal_kernel_general(x12_ref, xa_ref, xm_ref, xx_ref,
                          w1_ref, b1_ref, w2_ref, b2_ref, o_ref):
    """General path: 3 first-layer dots + ONE fused second-layer dot.

    w1 = stack(W11, W21, W31)    (3, H, H) bf16
    b1 = stack(b11, b21, b31)    (3, 1, H) f32
    w2 = [W12 ; W22 ; W32]       (3H, H)   bf16
    b2 = b12 + b22 + b32         (1, H)    f32
    """
    wdt = w1_ref.dtype

    def first_layer(x_ref, k):
        h = jnp.dot(x_ref[...].astype(wdt), w1_ref[k],
                    preferred_element_type=jnp.float32)
        return jnp.maximum(h + b1_ref[k], 0.0).astype(wdt)

    h_cat = jnp.concatenate(
        [first_layer(xa_ref, 0), first_layer(xm_ref, 1), first_layer(xx_ref, 2)],
        axis=-1)                                           # (tm, 3H)
    x3 = jnp.dot(h_cat, w2_ref[...],
                 preferred_element_type=jnp.float32) + b2_ref[...]
    o_ref[...] = (jax.nn.sigmoid(x3) * x12_ref[...].astype(jnp.float32)
                  ).astype(o_ref.dtype)


# --------------------------------------------------------------------------- #
# Wrapper
# --------------------------------------------------------------------------- #
def recalibrate_block(x12, x3_add, x3_mean, x3_max, params, *,
                      mxu_dtype=jnp.bfloat16, tm=None):
    """Fused forward of RecalibrateBlock_x3_3.

    params: w11,b11,w12,b12, w21,b21,w22,b22, w31,b31,w32,b32.
    Weights are stored as (in, out) = W_torch.T; biases as (H,) (or (1, H)).
    """
    orig_shape = x12.shape
    H = orig_shape[-1]
    out_dtype = x12.dtype

    x12f, xa, xm, xx = (a.reshape(-1, H) for a in (x12, x3_add, x3_mean, x3_max))
    N = x12f.shape[0]

    w = {k: params[k].astype(mxu_dtype)
         for k in ("w11", "w12", "w21", "w22", "w31", "w32")}
    b = {k: params[k].reshape(-1).astype(jnp.float32)
         for k in ("b11", "b12", "b21", "b22", "b31", "b32")}
    b2_sum = (b["b12"] + b["b22"] + b["b32"]).reshape(1, H)

    act_bytes = jnp.dtype(out_dtype).itemsize
    in_bytes = jnp.dtype(x3_add.dtype).itemsize
    mxu_bytes = jnp.dtype(mxu_dtype).itemsize

    packed_small = 3 * H <= 128

    if packed_small:
        Kp = 128
        # Lane-concatenate the three MLP inputs (single bf16 write) so the
        # block-diagonal first layer is ONE 128-wide matmul.
        pad = jnp.zeros((N, Kp - 3 * H), mxu_dtype)
        xcat = jnp.concatenate([xa.astype(mxu_dtype), xm.astype(mxu_dtype),
                                xx.astype(mxu_dtype), pad], axis=-1)        # (N, 128)
        zH = jnp.zeros((H, H), mxu_dtype)
        w1 = jnp.block([[w["w11"], zH, zH],
                        [zH, w["w21"], zH],
                        [zH, zH, w["w31"]]])                                # (3H, 3H)
        w1 = jnp.pad(w1, ((0, Kp - 3 * H), (0, Kp - 3 * H)))                # (128, 128)
        b1 = jnp.pad(jnp.concatenate([b["b11"], b["b21"], b["b31"]]),
                     (0, Kp - 3 * H)).reshape(1, Kp)
        w2 = jnp.pad(jnp.concatenate([w["w12"], w["w22"], w["w32"]], axis=0),
                     ((0, Kp - 3 * H), (0, 0)))                             # (128, H)

        weight_bytes = (Kp * Kp + Kp * H) * mxu_bytes + (Kp + H) * 4
        flops_per_row = 2 * Kp * Kp + 2 * Kp * H
        row_bytes = Kp * mxu_bytes + 2 * H * act_bytes

        def tile_bytes(t):   # double-buffered act tiles + f32 intermediate h
            return 2 * t * row_bytes + t * Kp * 4
    else:
        # General path: arrays kept at native H (full-extent last-dim blocks).
        w1 = jnp.stack([w["w11"], w["w21"], w["w31"]])                      # (3, H, H)
        b1 = jnp.stack([b["b11"], b["b21"], b["b31"]]).reshape(3, 1, H)
        w2 = jnp.concatenate([w["w12"], w["w22"], w["w32"]], axis=0)        # (3H, H)

        weight_bytes = 6 * H * H * mxu_bytes + 4 * H * 4
        flops_per_row = 12 * H * H
        row_bytes = H * (3 * in_bytes + 2 * act_bytes)

        def tile_bytes(t):   # double-buffered act tiles + f32 h_cat/x3
            return 2 * t * row_bytes + 4 * t * H * 4

    vmem_limit = _vmem_limit_bytes()
    budget = int(0.8 * vmem_limit)

    if tm is None:
        tm = 1024
        while tm > 8 and weight_bytes + tile_bytes(tm) > budget:
            tm //= 2
        if _is_v7x() and N >= 16:
            # Only v7x has 2 TensorCores: keep >= 2 grid steps for megacore.
            tm = min(tm, _round_up(pl.cdiv(N, 2), 8))
    if tm >= N:
        tm = N                      # single block covering all rows
    else:
        tm = max(8, (tm // 8) * 8)  # multiple of 8; ragged last block is fine

    grid = (pl.cdiv(N, tm),)

    cost = pl.CostEstimate(
        flops=int(N) * int(flops_per_row),
        transcendentals=2 * int(N) * int(H),        # sigmoid -> exp + reciprocal
        bytes_accessed=int(N) * int(row_bytes) + int(weight_bytes),
    )

    def _launch(single_buffer_weights):
        def res_spec(shape):
            idx = lambda i: (0,) * len(shape)
            if single_buffer_weights:
                # Constant index_map => nothing to prefetch; one buffer halves
                # the resident weight VMEM.
                return pl.BlockSpec(shape, idx, pipeline_mode=pl.Buffered(1))
            return pl.BlockSpec(shape, idx)

        x12_spec = pl.BlockSpec((tm, H), lambda i: (i, 0))
        out_spec = pl.BlockSpec((tm, H), lambda i: (i, 0))

        if packed_small:
            kernel = _recal_kernel_packed
            in_specs = [x12_spec,
                        pl.BlockSpec((tm, Kp), lambda i: (i, 0)),
                        res_spec((Kp, Kp)), res_spec((1, Kp)),
                        res_spec((Kp, H)), res_spec((1, H))]
            operands = (x12f, xcat, w1, b1, w2, b2_sum)
        else:
            kernel = _recal_kernel_general
            in_specs = [x12_spec,
                        pl.BlockSpec((tm, H), lambda i: (i, 0)),
                        pl.BlockSpec((tm, H), lambda i: (i, 0)),
                        pl.BlockSpec((tm, H), lambda i: (i, 0)),
                        res_spec((3, H, H)), res_spec((3, 1, H)),
                        res_spec((3 * H, H)), res_spec((1, H))]
            operands = (x12f, xa, xm, xx, w1, b1, w2, b2_sum)

        return pl.pallas_call(
            kernel,
            out_shape=jax.ShapeDtypeStruct((N, H), out_dtype),
            grid=grid,
            in_specs=in_specs,
            out_specs=out_spec,
            compiler_params=pltpu.CompilerParams(
                dimension_semantics=("parallel",),
                vmem_limit_bytes=int(vmem_limit),
            ),
            cost_estimate=cost,
        )(*operands)

    try:
        out = _launch(True)
    except Exception:
        # Compatibility fallback if single-buffered pipeline_mode is rejected
        # by this JAX build; weights are just double-buffered (same results).
        out = _launch(False)

    return out.reshape(orig_shape)


# --------------------------------------------------------------------------- #
# Reference + demo
# --------------------------------------------------------------------------- #
def _init_params(key, hidden, dtype=jnp.float32):
    keys = jax.random.split(key, 12)
    names = ["w11", "b11", "w12", "b12", "w21", "b21", "w22", "b22",
             "w31", "b31", "w32", "b32"]
    params = {}
    scale = 1.0 / jnp.sqrt(hidden)
    for i, name in enumerate(names):
        if name.startswith("w"):
            params[name] = (jax.random.normal(keys[i], (hidden, hidden), jnp.float32)
                            * scale).astype(dtype)
        else:
            params[name] = (jax.random.normal(keys[i], (hidden,), jnp.float32)
                            * 0.1).astype(dtype)
    return params


def _reference(x12, x3_add, x3_mean, x3_max, p):
    def mlp(x, w1, b1, w2, b2):
        h = jnp.maximum(x @ w1 + b1, 0.0)
        return h @ w2 + b2
    x3 = (mlp(x3_add, p["w11"], p["b11"], p["w12"], p["b12"])
          + mlp(x3_mean, p["w21"], p["b21"], p["w22"], p["b22"])
          + mlp(x3_max, p["w31"], p["b31"], p["w32"], p["b32"]))
    return jax.nn.sigmoid(x3) * x12


if __name__ == "__main__":
    key = jax.random.PRNGKey(0)

    # ---- small hidden size (packed block-diagonal path), demo shape -------- #
    hidden, batch, seq = 32, 2, 8
    kp, k1, k2, k3, k4, key = jax.random.split(key, 6)
    params = _init_params(kp, hidden)
    x12 = jax.random.normal(k1, (batch, seq, hidden), jnp.float32)
    x3_add = jax.random.normal(k2, (batch, seq, hidden), jnp.float32)
    x3_mean = jax.random.normal(k3, (batch, seq, hidden), jnp.float32)
    x3_max = jax.random.normal(k4, (batch, seq, hidden), jnp.float32)

    out = jax.block_until_ready(
        recalibrate_block(x12, x3_add, x3_mean, x3_max, params))
    ref = _reference(x12, x3_add, x3_mean, x3_max, params)
    assert out.shape == x12.shape and out.dtype == x12.dtype
    # bf16 MXU operands -> tolerance loosened vs. the pure-f32 reference.
    assert jnp.allclose(out, ref, atol=3e-2, rtol=3e-2), "packed path mismatch"

    # ---- larger hidden size (general fused path) ---------------------------- #
    hidden2, batch2, seq2 = 128, 1, 16
    kp, k1, k2, k3, k4, key = jax.random.split(key, 6)
    params2 = _init_params(kp, hidden2)
    y12 = jax.random.normal(k1, (batch2, seq2, hidden2), jnp.float32)
    y_add = jax.random.normal(k2, (batch2, seq2, hidden2), jnp.float32)
    y_mean = jax.random.normal(k3, (batch2, seq2, hidden2), jnp.float32)
    y_max = jax.random.normal(k4, (batch2, seq2, hidden2), jnp.float32)

    out2 = jax.block_until_ready(
        recalibrate_block(y12, y_add, y_mean, y_max, params2))
    ref2 = _reference(y12, y_add, y_mean, y_max, params2)
    assert out2.shape == y12.shape
    assert jnp.allclose(out2, ref2, atol=5e-2, rtol=5e-2), "general path mismatch"

    print("KERNEL_OK")
</pallas_src>

<mosaic_0001>
module attributes {stable_mosaic.version = 11 : i64} {
  func.func @_recal_kernel_packed(%arg0: i32, %arg1: memref<16x32xf32, #tpu.memory_space<vmem>>, %arg2: memref<16x128xbf16, #tpu.memory_space<vmem>>, %arg3: memref<128x128xbf16, #tpu.memory_space<vmem>>, %arg4: memref<1x128xf32, #tpu.memory_space<vmem>>, %arg5: memref<128x32xbf16, #tpu.memory_space<vmem>>, %arg6: memref<1x32xf32, #tpu.memory_space<vmem>>, %arg7: memref<16x32xf32, #tpu.memory_space<vmem>>) attributes {dimension_semantics = [#tpu.dimension_semantics<parallel>], iteration_bounds = array<i64: 1>, scalar_prefetch = 0 : i64, scratch_operands = 0 : i64, tpu.core_type = #tpu.core_type<tc>, window_params = [{transform_indices = @transform_0, window_bounds = array<i64: 16, 32>}, {transform_indices = @transform_1, window_bounds = array<i64: 16, 128>}, {pipeline_mode = #tpu.pipeline_mode<synchronous>, transform_indices = @transform_2, window_bounds = array<i64: 128, 128>}, {pipeline_mode = #tpu.pipeline_mode<synchronous>, transform_indices = @transform_3, window_bounds = array<i64: 1, 128>}, {pipeline_mode = #tpu.pipeline_mode<synchronous>, transform_indices = @transform_4, window_bounds = array<i64: 128, 32>}, {pipeline_mode = #tpu.pipeline_mode<synchronous>, transform_indices = @transform_5, window_bounds = array<i64: 1, 32>}, {transform_indices = @transform_6, window_bounds = array<i64: 16, 32>}]} {
    %c0 = arith.constant 0 : index
    %c0_0 = arith.constant 0 : index
    %0 = vector.load %arg2[%c0, %c0_0] : memref<16x128xbf16, #tpu.memory_space<vmem>>, vector<16x128xbf16>
    %c0_1 = arith.constant 0 : index
    %c0_2 = arith.constant 0 : index
    %1 = vector.load %arg3[%c0_1, %c0_2] : memref<128x128xbf16, #tpu.memory_space<vmem>>, vector<128x128xbf16>
    %cst = arith.constant dense<0.000000e+00> : vector<16x128xf32>
    %2 = tpu.matmul %0, %1, %cst {dimension_numbers = #tpu.dot_dimension_numbers<[1], [0], [0], [1], [0, 0, 1, 1], [], []>} : vector<16x128xbf16>, vector<128x128xbf16>, vector<16x128xf32> -> vector<16x128xf32>
    %c0_3 = arith.constant 0 : index
    %c0_4 = arith.constant 0 : index
    %3 = vector.load %arg4[%c0_3, %c0_4] : memref<1x128xf32, #tpu.memory_space<vmem>>, vector<1x128xf32>
    %4 = vector.broadcast %3 : vector<1x128xf32> to vector<16x128xf32>
    %5 = arith.addf %2, %4 : vector<16x128xf32>
    %cst_5 = arith.constant 0.000000e+00 : f32
    %6 = vector.broadcast %cst_5 : f32 to vector<16x128xf32>
    %7 = arith.maximumf %5, %6 : vector<16x128xf32>
    %8 = arith.truncf %7 : vector<16x128xf32> to vector<16x128xbf16>
    %c0_6 = arith.constant 0 : index
    %c0_7 = arith.constant 0 : index
    %9 = vector.load %arg5[%c0_6, %c0_7] : memref<128x32xbf16, #tpu.memory_space<vmem>>, vector<128x32xbf16>
    %cst_8 = arith.constant dense<0.000000e+00> : vector<16x32xf32>
    %10 = tpu.matmul %8, %9, %cst_8 {dimension_numbers = #tpu.dot_dimension_numbers<[1], [0], [0], [1], [0, 0, 1, 1], [], []>} : vector<16x128xbf16>, vector<128x32xbf16>, vector<16x32xf32> -> vector<16x32xf32>
    %c0_9 = arith.constant 0 : index
    %c0_10 = arith.constant 0 : index
    %11 = vector.load %arg6[%c0_9, %c0_10] : memref<1x32xf32, #tpu.memory_space<vmem>>, vector<1x32xf32>
    %12 = vector.broadcast %11 : vector<1x32xf32> to vector<16x32xf32>
    %13 = arith.addf %10, %12 : vector<16x32xf32>
    %14 = arith.negf %13 : vector<16x32xf32>
    %15 = math.exp %14 : vector<16x32xf32>
    %cst_11 = arith.constant 1.000000e+00 : f32
    %16 = vector.broadcast %cst_11 : f32 to vector<16x32xf32>
    %17 = arith.addf %16, %15 : vector<16x32xf32>
    %18 = arith.divf %16, %17 : vector<16x32xf32>
    %c0_12 = arith.constant 0 : index
    %c0_13 = arith.constant 0 : index
    %19 = vector.load %arg1[%c0_12, %c0_13] : memref<16x32xf32, #tpu.memory_space<vmem>>, vector<16x32xf32>
    %20 = arith.mulf %18, %19 : vector<16x32xf32>
    %c0_14 = arith.constant 0 : index
    %c0_15 = arith.constant 0 : index
    %21 = vector.load %arg7[%c0_14, %c0_15] : memref<16x32xf32, #tpu.memory_space<vmem>>, vector<16x32xf32>
    tpu.vector_store %arg7[%c0_14, %c0_15], %20 {strides = array<i32>} : memref<16x32xf32, #tpu.memory_space<vmem>>, vector<16x32xf32>,
    return
  }
  func.func @transform_0(%arg0: i32) -> (i32, i32) {
    %c0_i32 = arith.constant 0 : i32
    %c0_i32_0 = arith.constant 0 : i32
    return %arg0, %c0_i32 : i32, i32
  }
  func.func @transform_1(%arg0: i32) -> (i32, i32) {
    %c0_i32 = arith.constant 0 : i32
    %c0_i32_0 = arith.constant 0 : i32
    return %arg0, %c0_i32 : i32, i32
  }
  func.func @transform_2(%arg0: i32) -> (i32, i32) {
    %c0_i32 = arith.constant 0 : i32
    %c0_i32_0 = arith.constant 0 : i32
    %c0_i32_1 = arith.constant 0 : i32
    return %c0_i32, %c0_i32_0 : i32, i32
  }
  func.func @transform_3(%arg0: i32) -> (i32, i32) {
    %c0_i32 = arith.constant 0 : i32
    %c0_i32_0 = arith.constant 0 : i32
    %c0_i32_1 = arith.constant 0 : i32
    return %c0_i32, %c0_i32_0 : i32, i32
  }
  func.func @transform_4(%arg0: i32) -> (i32, i32) {
    %c0_i32 = arith.constant 0 : i32
    %c0_i32_0 = arith.constant 0 : i32
    %c0_i32_1 = arith.constant 0 : i32
    return %c0_i32, %c0_i32_0 : i32, i32
  }
  func.func @transform_5(%arg0: i32) -> (i32, i32) {
    %c0_i32 = arith.constant 0 : i32
    %c0_i32_0 = arith.constant 0 : i32
    %c0_i32_1 = arith.constant 0 : i32
    return %c0_i32, %c0_i32_0 : i32, i32
  }
  func.func @transform_6(%arg0: i32) -> (i32, i32) {
    %c0_i32 = arith.constant 0 : i32
    %c0_i32_0 = arith.constant 0 : i32
    return %arg0, %c0_i32 : i32, i32
  }
}

module attributes {stable_mosaic.version = 11 : i64} {
  func.func @_recal_kernel_packed(%arg0: i32, %arg1: memref<16x32xf32, #tpu.memory_space<vmem>>, %arg2: memref<16x128xbf16, #tpu.memory_space<vmem>>, %arg3: memref<128x128xbf16, #tpu.memory_space<vmem>>, %arg4: memref<1x128xf32, #tpu.memory_space<vmem>>, %arg5: memref<128x32xbf16, #tpu.memory_space<vmem>>, %arg6: memref<1x32xf32, #tpu.memory_space<vmem>>, %arg7: memref<16x32xf32, #tpu.memory_space<vmem>>) attributes {dimension_semantics = [#tpu.dimension_semantics<parallel>], iteration_bounds = array<i64: 1>, scalar_prefetch = 0 : i64, scratch_operands = 0 : i64, tpu.core_type = #tpu.core_type<tc>, window_params = [{transform_indices = @transform_0, window_bounds = array<i64: 16, 32>}, {transform_indices = @transform_1, window_bounds = array<i64: 16, 128>}, {pipeline_mode = #tpu.pipeline_mode<synchronous>, transform_indices = @transform_2, window_bounds = array<i64: 128, 128>}, {pipeline_mode = #tpu.pipeline_mode<synchronous>, transform_indices = @transform_3, window_bounds = array<i64: 1, 128>}, {pipeline_mode = #tpu.pipeline_mode<synchronous>, transform_indices = @transform_4, window_bounds = array<i64: 128, 32>}, {pipeline_mode = #tpu.pipeline_mode<synchronous>, transform_indices = @transform_5, window_bounds = array<i64: 1, 32>}, {transform_indices = @transform_6, window_bounds = array<i64: 16, 32>}]} {
    %c0 = arith.constant 0 : index
    %c0_0 = arith.constant 0 : index
    %0 = vector.load %arg2[%c0, %c0_0] : memref<16x128xbf16, #tpu.memory_space<vmem>>, vector<16x128xbf16>
    %c0_1 = arith.constant 0 : index
    %c0_2 = arith.constant 0 : index
    %1 = vector.load %arg3[%c0_1, %c0_2] : memref<128x128xbf16, #tpu.memory_space<vmem>>, vector<128x128xbf16>
    %cst = arith.constant dense<0.000000e+00> : vector<16x128xf32>
    %2 = tpu.matmul %0, %1, %cst {dimension_numbers = #tpu.dot_dimension_numbers<[1], [0], [0], [1], [0, 0, 1, 1], [], []>} : vector<16x128xbf16>, vector<128x128xbf16>, vector<16x128xf32> -> vector<16x128xf32>
    %c0_3 = arith.constant 0 : index
    %c0_4 = arith.constant 0 : index
    %3 = vector.load %arg4[%c0_3, %c0_4] : memref<1x128xf32, #tpu.memory_space<vmem>>, vector<1x128xf32>
    %4 = vector.broadcast %3 : vector<1x128xf32> to vector<16x128xf32>
    %5 = arith.addf %2, %4 : vector<16x128xf32>
    %cst_5 = arith.constant 0.000000e+00 : f32
    %6 = vector.broadcast %cst_5 : f32 to vector<16x128xf32>
    %7 = arith.maximumf %5, %6 : vector<16x128xf32>
    %8 = arith.truncf %7 : vector<16x128xf32> to vector<16x128xbf16>
    %c0_6 = arith.constant 0 : index
    %c0_7 = arith.constant 0 : index
    %9 = vector.load %arg5[%c0_6, %c0_7] : memref<128x32xbf16, #tpu.memory_space<vmem>>, vector<128x32xbf16>
    %cst_8 = arith.constant dense<0.000000e+00> : vector<16x32xf32>
    %10 = tpu.matmul %8, %9, %cst_8 {dimension_numbers = #tpu.dot_dimension_numbers<[1], [0], [0], [1], [0, 0, 1, 1], [], []>} : vector<16x128xbf16>, vector<128x32xbf16>, vector<16x32xf32> -> vector<16x32xf32>
    %c0_9 = arith.constant 0 : index
    %c0_10 = arith.constant 0 : index
    %11 = vector.load %arg6[%c0_9, %c0_10] : memref<1x32xf32, #tpu.memory_space<vmem>>, vector<1x32xf32>
    %12 = vector.broadcast %11 : vector<1x32xf32> to vector<16x32xf32>
    %13 = arith.addf %10, %12 : vector<16x32xf32>
    %14 = arith.negf %13 : vector<16x32xf32>
    %15 = math.exp %14 : vector<16x32xf32>
    %cst_11 = arith.constant 1.000000e+00 : f32
    %16 = vector.broadcast %cst_11 : f32 to vector<16x32xf32>
    %17 = arith.addf %16, %15 : vector<16x32xf32>
    %18 = arith.divf %16, %17 : vector<16x32xf32>
    %c0_12 = arith.constant 0 : index
    %c0_13 = arith.constant 0 : index
    %19 = vector.load %arg1[%c0_12, %c0_13] : memref<16x32xf32, #tpu.memory_space<vmem>>, vector<16x32xf32>
    %20 = arith.mulf %18, %19 : vector<16x32xf32>
    %c0_14 = arith.constant 0 : index
    %c0_15 = arith.constant 0 : index
    %21 = vector.load %arg7[%c0_14, %c0_15] : memref<16x32xf32, #tpu.memory_space<vmem>>, vector<16x32xf32>
    tpu.vector_store %arg7[%c0_14, %c0_15], %20 {strides = array<i32>} : memref<16x32xf32, #tpu.memory_space<vmem>>, vector<16x32xf32>,
    return
  }
  func.func @transform_0(%arg0: i32) -> (i32, i32) {
    %c0_i32 = arith.constant 0 : i32
    %c0_i32_0 = arith.constant 0 : i32
    return %arg0, %c0_i32 : i32, i32
  }
  func.func @transform_1(%arg0: i32) -> (i32, i32) {
    %c0_i32 = arith.constant 0 : i32
    %c0_i32_0 = arith.constant 0 : i32
    return %arg0, %c0_i32 : i32, i32
  }
  func.func @transform_2(%arg0: i32) -> (i32, i32) {
    %c0_i32 = arith.constant 0 : i32
    %c0_i32_0 = arith.constant 0 : i32
    %c0_i32_1 = arith.constant 0 : i32
    return %c0_i32, %c0_i32_0 : i32, i32
  }
  func.func @transform_3(%arg0: i32) -> (i32, i32) {
    %c0_i32 = arith.constant 0 : i32
    %c0_i32_0 = arith.constant 0 : i32
    %c0_i32_1 = arith.constant 0 : i32
    return %c0_i32, %c0_i32_0 : i32, i32
  }
  func.func @transform_4(%arg0: i32) -> (i32, i32) {
    %c0_i32 = arith.constant 0 : i32
    %c0_i32_0 = arith.constant 0 : i32
    %c0_i32_1 = arith.constant 0 : i32
    return %c0_i32, %c0_i32_0 : i32, i32
  }
  func.func @transform_5(%arg0: i32) -> (i32, i32) {
    %c0_i32 = arith.constant 0 : i32
    %c0_i32_0 = arith.constant 0 : i32
    %c0_i32_1 = arith.constant 0 : i32
    return %c0_i32, %c0_i32_0 : i32, i32
  }
  func.func @transform_6(%arg0: i32) -> (i32, i32) {
    %c0_i32 = arith.constant 0 : i32
    %c0_i32_0 = arith.constant 0 : i32
    return %arg0, %c0_i32 : i32, i32
  }
}

</mosaic_0001>

<bundles_post_ra>
// kernel: tpu_custom_call.1
= control target key start
LH: loop header
LB: loop body
LE: loop exit
PB: predicated region body
PF: predicated region fallthrough
CT: control target
= control target key end

     0   :  { %11 = vsyncpa [#allocation3], 0  ;;  %s597_s0 = inlined_call_operand.vmem [shape: f32[16,32], index: 0, kind: input, shape index: {}]   ;;  %s598_s1 = inlined_call_operand.hbm [shape: bf16[16,128], index: 1, kind: input, shape index: {}]   ;;  %s599_s2 = inlined_call_operand.vmem [shape: bf16[128,128], index: 2, kind: input, shape index: {}]   ;;  %s600_s3 = inlined_call_operand.vmem [shape: f32[1,128], index: 3, kind: input, shape index: {}]   ;;  %s601_s4 = inlined_call_operand.vmem [shape: bf16[128,32], index: 4, kind: input, shape index: {}]   ;;  %s602_s5 = inlined_call_operand.vmem [shape: f32[1,32], index: 5, kind: input, shape index: {}]   ;;  %s603_s6 = inlined_call_operand.hbm [shape: f32[16,32], index: 6, kind: output, shape index: {}]  }
   0x1   :  { %12 = vsyncpa [#allocation4], 0  ;;  %s470_s21 = smov [#allocation2]   ;;  %s422_s25 = scalar_lea.hbm %s598_s1, 128 }
   0x2   :  { %s20_s22 = sshll.u32 %s470_s21, 4  ;;  %p423_p0 = scmp.ne.s32.totalorder %s598_s1, %s422_s25  ;;  %s21_s22 = int_to_ptr.vmem [resolvable:$true] %s20_s22 }
   0x3   :  { %p426_p1 = scmp.lt.u32.totalorder %s422_s25, %s598_s1 }
   0x5   :  { %p428_p2 = pnand %p426_p1, %p423_p0 }
   0x7   :  { %431 = shalt.err (!%p428_p2)
}
   0x8   :  { %s432_s30 = scalar_lea.vmem %s21_s22, 128  ;;  %p437_p4 = scmp.lt.s32.totalorder %s21_s22, %s21_s22 }
   0x9   :  { %p433_p3 = scmp.ne.s32.totalorder %s21_s22, %s432_s30  ;;  %p438_p5 = scmp.lt.s32.totalorder %s432_s30, %s432_s30 }
   0xb   :  { %p439_p6 = por %p438_p5, %p437_p4 }
   0xd   :  { %p440_p7 = pnand %p439_p6, %p433_p3 }
   0xf   :  { %443 = shalt.err (!%p440_p7)
}
  0x10   :  { %s471_s7 = smov 64   ;;  %s472_s8 = smov 4  }
  0x11   :  { %26 = dma.hbm_to_vmem [thread:$0]  %s598_s1, 128, %s21_s22, [#allocation3], %s471_s7, %s471_s7, %s472_s8  }
  0x12   :  { %466 = dma.done.wait [#allocation3], 128  }
  0x13   :  { %467 = vsyncadd [#allocation3], 4294967168  ;;  %v473_v0 = vmov 0.0   ;;  %vm474_vm0 = vmmov 0   ;;  %v397_v1 = vld [vmem:[%s599_s2] sm:$0xff]   ;;  %v398_v2 = vld [vmem:[%s599_s2 + $0x8] sm:$0xff]  }
  0x14   :  { %349 = vmatprep.subr.bf16.mxu0 %v473_v0  ;;  %365 = vmatprep.mubr.msk.bf16.mxu0 %vm474_vm0, %v473_v0  ;;  %v399_v3 = vld [vmem:[%s599_s2 + $0x10] sm:$0xff]   ;;  %v406_v4 = vld [vmem:[%s601_s4] sm:$0xff]   ;;  %v400_v5 = vld [vmem:[%s599_s2 + $0x18] sm:$0xff]   ;;  %vm290_vm1 = vcmask 261120  }
  0x15   :  { %369 = vmatprep.subr.bf16.mxu1 %v473_v0  ;;  %385 = vmatprep.mubr.msk.bf16.mxu1 %vm474_vm0, %v473_v0  ;;  %v407_v6 = vld [vmem:[%s601_s4 + $0x8] sm:$0xff]   ;;  %v401_v7 = vld [vmem:[%s599_s2 + $0x20] sm:$0xff]   ;;  %v408_v8 = vld [vmem:[%s601_s4 + $0x10] sm:$0xff]  }
  0x16   :  { %350 = vmatpush3.bf16.msra.mxu0 %v397_v1  ;;  %370 = vmatpush3.bf16.msra.mxu1 %v406_v4  ;;  %v402_v9 = vld [vmem:[%s599_s2 + $0x28] sm:$0xff]   ;;  %v409_v10 = vld [vmem:[%s601_s4 + $0x18] sm:$0xff]   ;;  %v403_v11 = vld [vmem:[%s599_s2 + $0x30] sm:$0xff]  }
  0x17   :  { %351 = vmatprep.subr.bf16.mxu0 %v473_v0  ;;  %371 = vmatprep.subr.bf16.mxu1 %v473_v0  ;;  %v410_v12 = vld [vmem:[%s601_s4 + $0x20] sm:$0xff]   ;;  %v404_v13 = vld [vmem:[%s599_s2 + $0x38] sm:$0xff]   ;;  %v411_v14 = vld [vmem:[%s601_s4 + $0x28] sm:$0xff]  }
  0x18   :  { %v405_v15 = vld [vmem:[#allocation2] sm:$0xff]   ;;  %v412_v16 = vld [vmem:[%s601_s4 + $0x30] sm:$0xff]   ;;  %v413_v17 = vld [vmem:[%s601_s4 + $0x38] sm:$0xff]  }
  0x19   :  { %v310_v18 = vld [vmem:[%s600_s3] ss:$0 sm:$0xff]  ;;  %v287_v43 = vld [vmem:[%s597_s0 + $0x8] sm:$0xff] }
  0x1a   :  { %352 = vmatpush3.bf16.msra.mxu0 %v398_v2  ;;  %372 = vmatpush3.bf16.msra.mxu1 %v407_v6  ;;  %v320_v28 = vld [vmem:[%s602_s5] ss:$0 sm:$0xff]  ;;  %s475_s5 = smov [#allocation5]  }
  0x1b   :  { %353 = vmatprep.subr.bf16.mxu0 %v473_v0  ;;  %373 = vmatprep.subr.bf16.mxu1 %v473_v0  ;;  %v286_v41 = vld [vmem:[%s597_s0] sm:$0xff]  ;;  %s298_s20 = sshll.u32 %s475_s5, 4  ;;  %s299_s20 = int_to_ptr.vmem [resolvable:$true] %s298_s20 }
  0x1c   :  { %s444_s23 = scalar_lea.vmem %s299_s20, 256  ;;  %p449_p9 = scmp.lt.s32.totalorder %s299_s20, %s299_s20 }
  0x1d   :  { %p445_p8 = scmp.ne.s32.totalorder %s299_s20, %s444_s23  ;;  %p450_p10 = scmp.lt.s32.totalorder %s444_s23, %s444_s23 }
  0x1e   :  { %354 = vmatpush3.bf16.msra.mxu0 %v399_v3  ;;  %374 = vmatpush3.bf16.msra.mxu1 %v408_v8 }
  0x1f   :  { %355 = vmatprep.subr.bf16.mxu0 %v473_v0  ;;  %375 = vmatprep.subr.bf16.mxu1 %v473_v0  ;;  %p451_p11 = por %p450_p10, %p449_p9 }
  0x21   :  { %p452_p12 = pnand %p451_p11, %p445_p8 }
  0x22   :  { %356 = vmatpush3.bf16.msra.mxu0 %v400_v5  ;;  %376 = vmatpush3.bf16.msra.mxu1 %v409_v10 }
  0x23   :  { %357 = vmatprep.subr.bf16.mxu0 %v473_v0  ;;  %377 = vmatprep.subr.bf16.mxu1 %v473_v0 }
  0x26   :  { %358 = vmatpush3.bf16.msra.mxu0 %v401_v7  ;;  %378 = vmatpush3.bf16.msra.mxu1 %v410_v12 }
  0x27   :  { %359 = vmatprep.subr.bf16.mxu0 %v473_v0  ;;  %379 = vmatprep.subr.bf16.mxu1 %v473_v0 }
  0x2a   :  { %360 = vmatpush3.bf16.msra.mxu0 %v402_v9  ;;  %380 = vmatpush3.bf16.msra.mxu1 %v411_v14 }
  0x2b   :  { %361 = vmatprep.subr.bf16.mxu0 %v473_v0  ;;  %381 = vmatprep.subr.bf16.mxu1 %v473_v0 }
  0x2e   :  { %362 = vmatpush3.bf16.msra.mxu0 %v403_v11  ;;  %382 = vmatpush3.bf16.msra.mxu1 %v412_v16 }
  0x2f   :  { %363 = vmatprep.subr.bf16.mxu0 %v473_v0  ;;  %383 = vmatprep.subr.bf16.mxu1 %v473_v0 }
  0x32   :  { %364 = vmatpush3.bf16.msra.mxu0 %v404_v13  ;;  %384 = vmatpush3.bf16.msra.mxu1 %v413_v17 }
  0x35   :  { %366 = vmatmul.mubr.bf16.vlgmr.msra.gmra.mrb[0].mxu0 %v405_v15 }
 0x108   :  { %v152_v19 = vpop.f32.mrb[0].mxu0 }
 0x109   :  { %v153_v20 = vadd.f32 %v310_v18, %v152_v19  ;;  %v367_v21 = vpop.f32.mrb[1].mxu0 }
 0x10a   :  { %v155_v22 = vpop.f32.mrb[2].mxu0 }
 0x10b   :  { %v156_v23 = vadd.f32 %v310_v18, %v155_v22  ;;  %v368_v24 = vpop.f32.mrb[3].mxu0  ;;  %v159_v25 = vmax.f32 %v153_v20, 0.0 }
 0x10d   :  { %v160_v26 = vmax.f32 %v156_v23, 0.0 }
 0x10f   :  { %v161_v27 = vpack.c.bf16 %v160_v26, %v159_v25 }
 0x111   :  { %386 = vmatmul.mubr.bf16.vlgmr.msra.gmra.mrb[0].mxu1 %v161_v27 }
 0x1e4   :  { %v267_v29 = vpop.f32.mrb[0].mxu1 }
 0x1e5   :  { %v268_v30 = vadd.f32 %v320_v28, %v267_v29  ;;  %v387_v31 = vpop.f32.mrb[1].mxu1 }
 0x1e6   :  { %v270_v32 = vpop.f32.mrb[2].mxu1 }
 0x1e7   :  { %v329_v33 = vmul.f32 -1.442695, %v268_v30  ;;  %v271_v34 = vadd.f32 %v320_v28, %v270_v32  ;;  %v388_v35 = vpop.f32.mrb[3].mxu1 }
 0x1e9   :  { %414 = vpow2.f32 %v329_v33  ;;  %v330_v36 = vmul.f32 -1.442695, %v271_v34 }
 0x1eb   :  { %416 = vpow2.f32 %v330_v36 }
 0x1f3   :  { %v415_v37 = vpop.eup %414 }
 0x1f4   :  { %v280_v38 = vadd.f32 1.0, %v415_v37 }
 0x1f5   :  { %v417_v39 = vpop.eup %416 }
 0x1f6   :  { %418 = vrcp.f32 %v280_v38  ;;  %v281_v40 = vadd.f32 1.0, %v417_v39 }
 0x1f8   :  { %420 = vrcp.f32 %v281_v40 }
 0x200   :  { %v419_v42 = vpop.eup %418 }
 0x201   :  { %v288_v44 = vmul.f32 %v419_v42, %v286_v41 }
 0x202   :  { %v421_v45 = vpop.eup %420 }
 0x203   :  { %v289_v46 = vmul.f32 %v421_v45, %v287_v43  ;;  %291 = vst.msk [vmem:[#allocation5] sm:$0xff] %vm290_vm1, %v288_v44 }
 0x205   :  { %292 = vst.msk [vmem:[#allocation5 + $0x8] sm:$0xff] %vm290_vm1, %v289_v46 }
 0x206   :  { %455 = shalt.err (!%p452_p12)
}
 0x207   :  { %s456_s26 = scalar_lea.hbm %s603_s6, 256 }
 0x208   :  { %p457_p13 = scmp.ne.s32.totalorder %s603_s6, %s456_s26  ;;  %p460_p0 = scmp.lt.u32.totalorder %s456_s26, %s603_s6 }
 0x20a   :  { %p462_p1 = pnand %p460_p0, %p457_p13 }
 0x20c   :  { %465 = shalt.err (!%p462_p1)
}
 0x20d   :  { %s476_s30 = smov 128   ;;  %s477_s7 = smov 8  }
 0x20e   :  { %304 = dma.vmem_to_hbm [thread:$0]  %s299_s20, 256, %s603_s6, [#allocation4], %s476_s30, %s476_s30, %s477_s7  }
 0x20f   :  { %468 = dma.done.wait [#allocation4], 256  }
 0x210   :  { %469 = vsyncadd [#allocation4], 4294967040 }
 0x211   :  { %308 = vsyncpa [#allocation3], 1 }
 0x212   :  { %309 = vsyncpa [#allocation4], 1 }

// kernel: tpu_custom_call.1
= control target key start
LH: loop header
LB: loop body
LE: loop exit
PB: predicated region body
PF: predicated region fallthrough
CT: control target
= control target key end

     0   :  { %11 = vsyncpa [#allocation3], 0  ;;  %s597_s0 = inlined_call_operand.vmem [shape: f32[16,32], index: 0, kind: input, shape index: {}]   ;;  %s598_s1 = inlined_call_operand.hbm [shape: bf16[16,128], index: 1, kind: input, shape index: {}]   ;;  %s599_s2 = inlined_call_operand.vmem [shape: bf16[128,128], index: 2, kind: input, shape index: {}]   ;;  %s600_s3 = inlined_call_operand.vmem [shape: f32[1,128], index: 3, kind: input, shape index: {}]   ;;  %s601_s4 = inlined_call_operand.vmem [shape: bf16[128,32], index: 4, kind: input, shape index: {}]   ;;  %s602_s5 = inlined_call_operand.vmem [shape: f32[1,32], index: 5, kind: input, shape index: {}]   ;;  %s603_s6 = inlined_call_operand.hbm [shape: f32[16,32], index: 6, kind: output, shape index: {}]  }
   0x1   :  { %12 = vsyncpa [#allocation4], 0  ;;  %s470_s21 = smov [#allocation2]   ;;  %s422_s25 = scalar_lea.hbm %s598_s1, 128 }
   0x2   :  { %s20_s22 = sshll.u32 %s470_s21, 4  ;;  %p423_p0 = scmp.ne.s32.totalorder %s598_s1, %s422_s25  ;;  %s21_s22 = int_to_ptr.vmem [resolvable:$true] %s20_s22 }
   0x3   :  { %p426_p1 = scmp.lt.u32.totalorder %s422_s25, %s598_s1 }
   0x5   :  { %p428_p2 = pnand %p426_p1, %p423_p0 }
   0x7   :  { %431 = shalt.err (!%p428_p2)
}
   0x8   :  { %s432_s30 = scalar_lea.vmem %s21_s22, 128  ;;  %p437_p4 = scmp.lt.s32.totalorder %s21_s22, %s21_s22 }
   0x9   :  { %p433_p3 = scmp.ne.s32.totalorder %s21_s22, %s432_s30  ;;  %p438_p5 = scmp.lt.s32.totalorder %s432_s30, %s432_s30 }
   0xb   :  { %p439_p6 = por %p438_p5, %p437_p4 }
   0xd   :  { %p440_p7 = pnand %p439_p6, %p433_p3 }
   0xf   :  { %443 = shalt.err (!%p440_p7)
}
  0x10   :  { %s471_s7 = smov 64   ;;  %s472_s8 = smov 4  }
  0x11   :  { %26 = dma.hbm_to_vmem [thread:$0]  %s598_s1, 128, %s21_s22, [#allocation3], %s471_s7, %s471_s7, %s472_s8  }
  0x12   :  { %466 = dma.done.wait [#allocation3], 128  }
  0x13   :  { %467 = vsyncadd [#allocation3], 4294967168  ;;  %v473_v0 = vmov 0.0   ;;  %vm474_vm0 = vmmov 0   ;;  %v397_v1 = vld [vmem:[%s599_s2] sm:$0xff]   ;;  %v398_v2 = vld [vmem:[%s599_s2 + $0x8] sm:$0xff]  }
  0x14   :  { %349 = vmatprep.subr.bf16.mxu0 %v473_v0  ;;  %365 = vmatprep.mubr.msk.bf16.mxu0 %vm474_vm0, %v473_v0  ;;  %v399_v3 = vld [vmem:[%s599_s2 + $0x10] sm:$0xff]   ;;  %v406_v4 = vld [vmem:[%s601_s4] sm:$0xff]   ;;  %v400_v5 = vld [vmem:[%s599_s2 + $0x18] sm:$0xff]   ;;  %vm290_vm1 = vcmask 261120  }
  0x15   :  { %369 = vmatprep.subr.bf16.mxu1 %v473_v0  ;;  %385 = vmatprep.mubr.msk.bf16.mxu1 %vm474_vm0, %v473_v0  ;;  %v407_v6 = vld [vmem:[%s601_s4 + $0x8] sm:$0xff]   ;;  %v401_v7 = vld [vmem:[%s599_s2 + $0x20] sm:$0xff]   ;;  %v408_v8 = vld [vmem:[%s601_s4 + $0x10] sm:$0xff]  }
  0x16   :  { %350 = vmatpush3.bf16.msra.mxu0 %v397_v1  ;;  %370 = vmatpush3.bf16.msra.mxu1 %v406_v4  ;;  %v402_v9 = vld [vmem:[%s599_s2 + $0x28] sm:$0xff]   ;;  %v409_v10 = vld [vmem:[%s601_s4 + $0x18] sm:$0xff]   ;;  %v403_v11 = vld [vmem:[%s599_s2 + $0x30] sm:$0xff]  }
  0x17   :  { %351 = vmatprep.subr.bf16.mxu0 %v473_v0  ;;  %371 = vmatprep.subr.bf16.mxu1 %v473_v0  ;;  %v410_v12 = vld [vmem:[%s601_s4 + $0x20] sm:$0xff]   ;;  %v404_v13 = vld [vmem:[%s599_s2 + $0x38] sm:$0xff]   ;;  %v411_v14 = vld [vmem:[%s601_s4 + $0x28] sm:$0xff]  }
  0x18   :  { %v405_v15 = vld [vmem:[#allocation2] sm:$0xff]   ;;  %v412_v16 = vld [vmem:[%s601_s4 + $0x30] sm:$0xff]   ;;  %v413_v17 = vld [vmem:[%s601_s4 + $0x38] sm:$0xff]  }
  0x19   :  { %v310_v18 = vld [vmem:[%s600_s3] ss:$0 sm:$0xff]  ;;  %v287_v43 = vld [vmem:[%s597_s0 + $0x8] sm:$0xff] }
  0x1a   :  { %352 = vmatpush3.bf16.msra.mxu0 %v398_v2  ;;  %372 = vmatpush3.bf16.msra.mxu1 %v407_v6  ;;  %v320_v28 = vld [vmem:[%s602_s5] ss:$0 sm:$0xff]  ;;  %s475_s5 = smov [#allocation5]  }
  0x1b   :  { %353 = vmatprep.subr.bf16.mxu0 %v473_v0  ;;  %373 = vmatprep.subr.bf16.mxu1 %v473_v0  ;;  %v286_v41 = vld [vmem:[%s597_s0] sm:$0xff]  ;;  %s298_s20 = sshll.u32 %s475_s5, 4  ;;  %s299_s20 = int_to_ptr.vmem [resolvable:$true] %s298_s20 }
  0x1c   :  { %s444_s23 = scalar_lea.vmem %s299_s20, 256  ;;  %p449_p9 = scmp.lt.s32.totalorder %s299_s20, %s299_s20 }
  0x1d   :  { %p445_p8 = scmp.ne.s32.totalorder %s299_s20, %s444_s23  ;;  %p450_p10 = scmp.lt.s32.totalorder %s444_s23, %s444_s23 }
  0x1e   :  { %354 = vmatpush3.bf16.msra.mxu0 %v399_v3  ;;  %374 = vmatpush3.bf16.msra.mxu1 %v408_v8 }
  0x1f   :  { %355 = vmatprep.subr.bf16.mxu0 %v473_v0  ;;  %375 = vmatprep.subr.bf16.mxu1 %v473_v0  ;;  %p451_p11 = por %p450_p10, %p449_p9 }
  0x21   :  { %p452_p12 = pnand %p451_p11, %p445_p8 }
  0x22   :  { %356 = vmatpush3.bf16.msra.mxu0 %v400_v5  ;;  %376 = vmatpush3.bf16.msra.mxu1 %v409_v10 }
  0x23   :  { %357 = vmatprep.subr.bf16.mxu0 %v473_v0  ;;  %377 = vmatprep.subr.bf16.mxu1 %v473_v0 }
  0x26   :  { %358 = vmatpush3.bf16.msra.mxu0 %v401_v7  ;;  %378 = vmatpush3.bf16.msra.mxu1 %v410_v12 }
  0x27   :  { %359 = vmatprep.subr.bf16.mxu0 %v473_v0  ;;  %379 = vmatprep.subr.bf16.mxu1 %v473_v0 }
  0x2a   :  { %360 = vmatpush3.bf16.msra.mxu0 %v402_v9  ;;  %380 = vmatpush3.bf16.msra.mxu1 %v411_v14 }
  0x2b   :  { %361 = vmatprep.subr.bf16.mxu0 %v473_v0  ;;  %381 = vmatprep.subr.bf16.mxu1 %v473_v0 }
  0x2e   :  { %362 = vmatpush3.bf16.msra.mxu0 %v403_v11  ;;  %382 = vmatpush3.bf16.msra.mxu1 %v412_v16 }
  0x2f   :  { %363 = vmatprep.subr.bf16.mxu0 %v473_v0  ;;  %383 = vmatprep.subr.bf16.mxu1 %v473_v0 }
  0x32   :  { %364 = vmatpush3.bf16.msra.mxu0 %v404_v13  ;;  %384 = vmatpush3.bf16.msra.mxu1 %v413_v17 }
  0x35   :  { %366 = vmatmul.mubr.bf16.vlgmr.msra.gmra.mrb[0].mxu0 %v405_v15 }
 0x108   :  { %v152_v19 = vpop.f32.mrb[0].mxu0 }
 0x109   :  { %v153_v20 = vadd.f32 %v310_v18, %v152_v19  ;;  %v367_v21 = vpop.f32.mrb[1].mxu0 }
 0x10a   :  { %v155_v22 = vpop.f32.mrb[2].mxu0 }
 0x10b   :  { %v156_v23 = vadd.f32 %v310_v18, %v155_v22  ;;  %v368_v24 = vpop.f32.mrb[3].mxu0  ;;  %v159_v25 = vmax.f32 %v153_v20, 0.0 }
 0x10d   :  { %v160_v26 = vmax.f32 %v156_v23, 0.0 }
 0x10f   :  { %v161_v27 = vpack.c.bf16 %v160_v26, %v159_v25 }
 0x111   :  { %386 = vmatmul.mubr.bf16.vlgmr.msra.gmra.mrb[0].mxu1 %v161_v27 }
 0x1e4   :  { %v267_v29 = vpop.f32.mrb[0].mxu1 }
 0x1e5   :  { %v268_v30 = vadd.f32 %v320_v28, %v267_v29  ;;  %v387_v31 = vpop.f32.mrb[1].mxu1 }
 0x1e6   :  { %v270_v32 = vpop.f32.mrb[2].mxu1 }
 0x1e7   :  { %v329_v33 = vmul.f32 -1.442695, %v268_v30  ;;  %v271_v34 = vadd.f32 %v320_v28, %v270_v32  ;;  %v388_v35 = vpop.f32.mrb[3].mxu1 }
 0x1e9   :  { %414 = vpow2.f32 %v329_v33  ;;  %v330_v36 = vmul.f32 -1.442695, %v271_v34 }
 0x1eb   :  { %416 = vpow2.f32 %v330_v36 }
 0x1f3   :  { %v415_v37 = vpop.eup %414 }
 0x1f4   :  { %v280_v38 = vadd.f32 1.0, %v415_v37 }
 0x1f5   :  { %v417_v39 = vpop.eup %416 }
 0x1f6   :  { %418 = vrcp.f32 %v280_v38  ;;  %v281_v40 = vadd.f32 1.0, %v417_v39 }
 0x1f8   :  { %420 = vrcp.f32 %v281_v40 }
 0x200   :  { %v419_v42 = vpop.eup %418 }
 0x201   :  { %v288_v44 = vmul.f32 %v419_v42, %v286_v41 }
 0x202   :  { %v421_v45 = vpop.eup %420 }
 0x203   :  { %v289_v46 = vmul.f32 %v421_v45, %v287_v43  ;;  %291 = vst.msk [vmem:[#allocation5] sm:$0xff] %vm290_vm1, %v288_v44 }
 0x205   :  { %292 = vst.msk [vmem:[#allocation5 + $0x8] sm:$0xff] %vm290_vm1, %v289_v46 }
 0x206   :  { %455 = shalt.err (!%p452_p12)
}
 0x207   :  { %s456_s26 = scalar_lea.hbm %s603_s6, 256 }
 0x208   :  { %p457_p13 = scmp.ne.s32.totalorder %s603_s6, %s456_s26  ;;  %p460_p0 = scmp.lt.u32.totalorder %s456_s26, %s603_s6 }
 0x20a   :  { %p462_p1 = pnand %p460_p0, %p457_p13 }
 0x20c   :  { %465 = shalt.err (!%p462_p1)
}
 0x20d   :  { %s476_s30 = smov 128   ;;  %s477_s7 = smov 8  }
 0x20e   :  { %304 = dma.vmem_to_hbm [thread:$0]  %s299_s20, 256, %s603_s6, [#allocation4], %s476_s30, %s476_s30, %s477_s7  }
 0x20f   :  { %468 = dma.done.wait [#allocation4], 256  }
 0x210   :  { %469 = vsyncadd [#allocation4], 4294967040 }
 0x211   :  { %308 = vsyncpa [#allocation3], 1 }
 0x212   :  { %309 = vsyncpa [#allocation4], 1 }

</bundles_post_ra>
